<compile_context>
chip_gen: v7x
topology: tpu7x:2x2x1
jax: 0.10.0
libtpu: 0.0.40
codegen_flags: <defaults>
</compile_context>

<pallas_src>
import functools

import jax
import jax.numpy as jnp
from jax.experimental import pallas as pl
from jax.experimental.pallas import tpu as pltpu

Z = 16            # latent dim
A = 8             # action dim
H = 200           # hidden dim (from the module definition)
IN = Z + A        # 24

# TPU-friendly padded dims (zero padding keeps semantics exact).
IN_P = 32         # 24  -> 32
H_P = 256         # 200 -> 256 (multiple of 128 lanes / full MXU tile)
Z_P = 128         # 16  -> 128 (lane-dense output slab)

TB_CAP = 4096     # hard cap on the batch tile (VMEM-safe on v5e/v6e/v7x)


def _round_up(n, m):
    return ((n + m - 1) // m) * m


def _cdiv(a, b):
    return (a + b - 1) // b


def _pick_tb(bx, tb):
    """16-aligned batch tile; >=2 grid steps when possible (v7x megacore)."""
    tb = max(16, min(int(tb), TB_CAP))
    if bx <= 32:
        return _round_up(bx, 16)                 # tiny batch: one small tile
    if bx <= tb:
        return _round_up(_cdiv(bx, 2), 16)       # split so both v7x TCs get work
    return _round_up(tb, 16)


def dynamics_mlp_kernel(x_ref,
                        w1_ref, b1_ref,
                        w2_ref, b2_ref,
                        w3_ref, b3_ref,
                        w4_ref, b4_ref,
                        o_ref):
    f32 = jnp.float32
    bf16 = jnp.bfloat16

    # Layer 1: bf16 x bf16 -> f32 MXU accumulation; bias add in f32.
    h = jnp.dot(x_ref[...], w1_ref[...], preferred_element_type=f32) + b1_ref[...]
    # ReLU after the bf16 cast (relu commutes with round-to-bf16): bf16 VALU on
    # v6e/v7x; the cast is required for the next MXU dot anyway.
    h = jnp.maximum(h.astype(bf16), 0.0)

    h = jnp.dot(h, w2_ref[...], preferred_element_type=f32) + b2_ref[...]
    h = jnp.maximum(h.astype(bf16), 0.0)

    h = jnp.dot(h, w3_ref[...], preferred_element_type=f32) + b3_ref[...]
    h = jnp.maximum(h.astype(bf16), 0.0)

    h = jnp.dot(h, w4_ref[...], preferred_element_type=f32) + b4_ref[...]
    # bf16 tanh (bf16 EUP path on v6e/v7x; Mosaic upcasts on v5e); bf16 output
    # slab halves HBM writeback.
    o_ref[...] = jnp.tanh(h.astype(bf16)).astype(o_ref.dtype)


def prepare_params(params):
    """Zero-pad to TPU-friendly shapes and cast weights to bf16 (done once)."""
    (w1, b1, w2, b2, w3, b3, w4, b4) = params

    def pad2(a, rows, cols):
        return jnp.pad(a, ((0, rows - a.shape[0]), (0, cols - a.shape[1])))

    return (
        pad2(w1, IN_P, H_P).astype(jnp.bfloat16), pad2(b1, 1, H_P),
        pad2(w2, H_P, H_P).astype(jnp.bfloat16), pad2(b2, 1, H_P),
        pad2(w3, H_P, H_P).astype(jnp.bfloat16), pad2(b3, 1, H_P),
        pad2(w4, H_P, Z_P).astype(jnp.bfloat16), pad2(b4, 1, Z_P),
    )


@functools.partial(jax.jit, static_argnames=("tb", "slice_output"))
def dynamics_mlp(x, padded_params, *, tb=2048, slice_output=True):
    """x: [B, z+a] float32.

    slice_output=True  -> [B, z]  float32 (module-equivalent output)
    slice_output=False -> [B, 128] bfloat16 padded slab (cols z..127 are exactly
                          0); use when the consumer can slice/fuse it itself to
                          skip one HBM read/write pass.
    """
    bx, in_dim = x.shape
    tb_eff = _pick_tb(bx, tb)

    x_p = jnp.pad(x.astype(jnp.bfloat16), ((0, 0), (0, IN_P - in_dim)))

    # Weights/biases: grid-constant blocks (fetched once, resident in VMEM).
    resident = lambda r, c: pl.BlockSpec((r, c), lambda i: (0, 0))

    out_padded = pl.pallas_call(
        dynamics_mlp_kernel,
        out_shape=jax.ShapeDtypeStruct((bx, Z_P), jnp.bfloat16),
        grid_spec=pltpu.PrefetchScalarGridSpec(
            num_scalar_prefetch=0,
            grid=(pl.cdiv(bx, tb_eff),),
            in_specs=[
                pl.BlockSpec((tb_eff, IN_P), lambda i: (i, 0)),   # x tile
                resident(IN_P, H_P), resident(1, H_P),            # layer 1
                resident(H_P, H_P),  resident(1, H_P),            # layer 2
                resident(H_P, H_P),  resident(1, H_P),            # layer 3
                resident(H_P, Z_P),  resident(1, Z_P),            # layer 4
            ],
            out_specs=pl.BlockSpec((tb_eff, Z_P), lambda i: (i, 0)),
        ),
        compiler_params=pltpu.CompilerParams(
            dimension_semantics=("parallel",),
            vmem_limit_bytes=32 * 1024 * 1024,
        ),
    )(x_p, *padded_params)

    if slice_output:
        return out_padded[:, :Z].astype(jnp.float32)
    return out_padded


def init_params(key):
    """Deterministic synthetic init (PyTorch-Linear-style uniform bounds)."""
    def linear(k, fan_in, fan_out):
        kw, kb = jax.random.split(k)
        bound = 1.0 / jnp.sqrt(fan_in)
        w = jax.random.uniform(kw, (fan_in, fan_out), jnp.float32, -bound, bound)
        b = jax.random.uniform(kb, (1, fan_out), jnp.float32, -bound, bound)
        return w, b

    k1, k2, k3, k4 = jax.random.split(key, 4)
    w1, b1 = linear(k1, IN, H)
    w2, b2 = linear(k2, H, H)
    w3, b3 = linear(k3, H, H)
    w4, b4 = linear(k4, H, Z)
    return (w1, b1, w2, b2, w3, b3, w4, b4)


def reference(x, params):
    (w1, b1, w2, b2, w3, b3, w4, b4) = params
    h = jnp.maximum(x @ w1 + b1, 0.0)
    h = jnp.maximum(h @ w2 + b2, 0.0)
    h = jnp.maximum(h @ w3 + b3, 0.0)
    return jnp.tanh(h @ w4 + b4)


if __name__ == "__main__":
    key = jax.random.PRNGKey(0)
    kx, kp = jax.random.split(key)
    params = init_params(kp)
    pparams = prepare_params(params)

    # Small example consistent with the module: x is [batch, z + a].
    B = 8
    x = jax.random.normal(kx, (B, IN), jnp.float32)
    out = jax.block_until_ready(dynamics_mlp(x, pparams))
    ref = reference(x, params)
    assert out.shape == (B, Z)
    assert out.dtype == jnp.float32
    assert jnp.allclose(out, ref, atol=3e-2, rtol=3e-2), \
        float(jnp.max(jnp.abs(out - ref)))

    # Multi-step grid plus a ragged last batch tile.
    x2 = jax.random.normal(jax.random.PRNGKey(1), (40, IN), jnp.float32)
    out2 = jax.block_until_ready(dynamics_mlp(x2, pparams, tb=16))
    ref2 = reference(x2, params)
    assert out2.shape == (40, Z)
    assert jnp.allclose(out2, ref2, atol=3e-2, rtol=3e-2), \
        float(jnp.max(jnp.abs(out2 - ref2)))

    # Padded-slab path (no wrapper slice pass): cols Z..127 are exactly zero.
    slab = jax.block_until_ready(dynamics_mlp(x2, pparams, tb=16, slice_output=False))
    assert slab.shape == (40, Z_P) and slab.dtype == jnp.bfloat16
    assert jnp.allclose(slab[:, :Z].astype(jnp.float32), ref2, atol=3e-2, rtol=3e-2)
    assert bool(jnp.all(slab[:, Z:] == 0))

    print("KERNEL_OK")
</pallas_src>

<mosaic_0001>
module attributes {stable_mosaic.version = 11 : i64} {
  func.func @dynamics_mlp_kernel(%arg0: i32, %arg1: memref<16x32xbf16, #tpu.memory_space<vmem>>, %arg2: memref<32x256xbf16, #tpu.memory_space<vmem>>, %arg3: memref<1x256xf32, #tpu.memory_space<vmem>>, %arg4: memref<256x256xbf16, #tpu.memory_space<vmem>>, %arg5: memref<1x256xf32, #tpu.memory_space<vmem>>, %arg6: memref<256x256xbf16, #tpu.memory_space<vmem>>, %arg7: memref<1x256xf32, #tpu.memory_space<vmem>>, %arg8: memref<256x128xbf16, #tpu.memory_space<vmem>>, %arg9: memref<1x128xf32, #tpu.memory_space<vmem>>, %arg10: memref<16x128xbf16, #tpu.memory_space<vmem>>) attributes {dimension_semantics = [#tpu.dimension_semantics<parallel>], iteration_bounds = array<i64: 1>, scalar_prefetch = 0 : i64, scratch_operands = 0 : i64, tpu.core_type = #tpu.core_type<tc>, window_params = [{transform_indices = @transform_0, window_bounds = array<i64: 16, 32>}, {pipeline_mode = #tpu.pipeline_mode<synchronous>, transform_indices = @transform_1, window_bounds = array<i64: 32, 256>}, {pipeline_mode = #tpu.pipeline_mode<synchronous>, transform_indices = @transform_2, window_bounds = array<i64: 1, 256>}, {pipeline_mode = #tpu.pipeline_mode<synchronous>, transform_indices = @transform_3, window_bounds = array<i64: 256, 256>}, {pipeline_mode = #tpu.pipeline_mode<synchronous>, transform_indices = @transform_4, window_bounds = array<i64: 1, 256>}, {pipeline_mode = #tpu.pipeline_mode<synchronous>, transform_indices = @transform_5, window_bounds = array<i64: 256, 256>}, {pipeline_mode = #tpu.pipeline_mode<synchronous>, transform_indices = @transform_6, window_bounds = array<i64: 1, 256>}, {pipeline_mode = #tpu.pipeline_mode<synchronous>, transform_indices = @transform_7, window_bounds = array<i64: 256, 128>}, {pipeline_mode = #tpu.pipeline_mode<synchronous>, transform_indices = @transform_8, window_bounds = array<i64: 1, 128>}, {transform_indices = @transform_9, window_bounds = array<i64: 16, 128>}]} {
    %c0 = arith.constant 0 : index
    %c0_0 = arith.constant 0 : index
    %0 = vector.load %arg1[%c0, %c0_0] : memref<16x32xbf16, #tpu.memory_space<vmem>>, vector<16x32xbf16>
    %c0_1 = arith.constant 0 : index
    %c0_2 = arith.constant 0 : index
    %1 = vector.load %arg2[%c0_1, %c0_2] : memref<32x256xbf16, #tpu.memory_space<vmem>>, vector<32x256xbf16>
    %cst = arith.constant dense<0.000000e+00> : vector<16x256xf32>
    %2 = tpu.matmul %0, %1, %cst {dimension_numbers = #tpu.dot_dimension_numbers<[1], [0], [0], [1], [0, 0, 1, 1], [], []>} : vector<16x32xbf16>, vector<32x256xbf16>, vector<16x256xf32> -> vector<16x256xf32>
    %c0_3 = arith.constant 0 : index
    %c0_4 = arith.constant 0 : index
    %3 = vector.load %arg3[%c0_3, %c0_4] : memref<1x256xf32, #tpu.memory_space<vmem>>, vector<1x256xf32>
    %4 = vector.broadcast %3 : vector<1x256xf32> to vector<16x256xf32>
    %5 = arith.addf %2, %4 : vector<16x256xf32>
    %6 = arith.truncf %5 : vector<16x256xf32> to vector<16x256xbf16>
    %cst_5 = arith.constant 0.000000e+00 : bf16
    %7 = vector.broadcast %cst_5 : bf16 to vector<16x256xbf16>
    %8 = arith.maximumf %6, %7 : vector<16x256xbf16>
    %c0_6 = arith.constant 0 : index
    %c0_7 = arith.constant 0 : index
    %9 = vector.load %arg4[%c0_6, %c0_7] : memref<256x256xbf16, #tpu.memory_space<vmem>>, vector<256x256xbf16>
    %cst_8 = arith.constant dense<0.000000e+00> : vector<16x256xf32>
    %10 = tpu.matmul %8, %9, %cst_8 {dimension_numbers = #tpu.dot_dimension_numbers<[1], [0], [0], [1], [0, 0, 1, 1], [], []>} : vector<16x256xbf16>, vector<256x256xbf16>, vector<16x256xf32> -> vector<16x256xf32>
    %c0_9 = arith.constant 0 : index
    %c0_10 = arith.constant 0 : index
    %11 = vector.load %arg5[%c0_9, %c0_10] : memref<1x256xf32, #tpu.memory_space<vmem>>, vector<1x256xf32>
    %12 = vector.broadcast %11 : vector<1x256xf32> to vector<16x256xf32>
    %13 = arith.addf %10, %12 : vector<16x256xf32>
    %14 = arith.truncf %13 : vector<16x256xf32> to vector<16x256xbf16>
    %cst_11 = arith.constant 0.000000e+00 : bf16
    %15 = vector.broadcast %cst_11 : bf16 to vector<16x256xbf16>
    %16 = arith.maximumf %14, %15 : vector<16x256xbf16>
    %c0_12 = arith.constant 0 : index
    %c0_13 = arith.constant 0 : index
    %17 = vector.load %arg6[%c0_12, %c0_13] : memref<256x256xbf16, #tpu.memory_space<vmem>>, vector<256x256xbf16>
    %cst_14 = arith.constant dense<0.000000e+00> : vector<16x256xf32>
    %18 = tpu.matmul %16, %17, %cst_14 {dimension_numbers = #tpu.dot_dimension_numbers<[1], [0], [0], [1], [0, 0, 1, 1], [], []>} : vector<16x256xbf16>, vector<256x256xbf16>, vector<16x256xf32> -> vector<16x256xf32>
    %c0_15 = arith.constant 0 : index
    %c0_16 = arith.constant 0 : index
    %19 = vector.load %arg7[%c0_15, %c0_16] : memref<1x256xf32, #tpu.memory_space<vmem>>, vector<1x256xf32>
    %20 = vector.broadcast %19 : vector<1x256xf32> to vector<16x256xf32>
    %21 = arith.addf %18, %20 : vector<16x256xf32>
    %22 = arith.truncf %21 : vector<16x256xf32> to vector<16x256xbf16>
    %cst_17 = arith.constant 0.000000e+00 : bf16
    %23 = vector.broadcast %cst_17 : bf16 to vector<16x256xbf16>
    %24 = arith.maximumf %22, %23 : vector<16x256xbf16>
    %c0_18 = arith.constant 0 : index
    %c0_19 = arith.constant 0 : index
    %25 = vector.load %arg8[%c0_18, %c0_19] : memref<256x128xbf16, #tpu.memory_space<vmem>>, vector<256x128xbf16>
    %cst_20 = arith.constant dense<0.000000e+00> : vector<16x128xf32>
    %26 = tpu.matmul %24, %25, %cst_20 {dimension_numbers = #tpu.dot_dimension_numbers<[1], [0], [0], [1], [0, 0, 1, 1], [], []>} : vector<16x256xbf16>, vector<256x128xbf16>, vector<16x128xf32> -> vector<16x128xf32>
    %c0_21 = arith.constant 0 : index
    %c0_22 = arith.constant 0 : index
    %27 = vector.load %arg9[%c0_21, %c0_22] : memref<1x128xf32, #tpu.memory_space<vmem>>, vector<1x128xf32>
    %28 = vector.broadcast %27 : vector<1x128xf32> to vector<16x128xf32>
    %29 = arith.addf %26, %28 : vector<16x128xf32>
    %30 = arith.truncf %29 : vector<16x128xf32> to vector<16x128xbf16>
    %31 = math.tanh %30 : vector<16x128xbf16>
    %c0_23 = arith.constant 0 : index
    %c0_24 = arith.constant 0 : index
    %32 = vector.load %arg10[%c0_23, %c0_24] : memref<16x128xbf16, #tpu.memory_space<vmem>>, vector<16x128xbf16>
    tpu.vector_store %arg10[%c0_23, %c0_24], %31 {strides = array<i32>} : memref<16x128xbf16, #tpu.memory_space<vmem>>, vector<16x128xbf16>,
    return
  }
  func.func @transform_0(%arg0: i32) -> (i32, i32) {
    %c0_i32 = arith.constant 0 : i32
    %c0_i32_0 = arith.constant 0 : i32
    return %arg0, %c0_i32 : i32, i32
  }
  func.func @transform_1(%arg0: i32) -> (i32, i32) {
    %c0_i32 = arith.constant 0 : i32
    %c0_i32_0 = arith.constant 0 : i32
    %c0_i32_1 = arith.constant 0 : i32
    return %c0_i32, %c0_i32_0 : i32, i32
  }
  func.func @transform_2(%arg0: i32) -> (i32, i32) {
    %c0_i32 = arith.constant 0 : i32
    %c0_i32_0 = arith.constant 0 : i32
    %c0_i32_1 = arith.constant 0 : i32
    return %c0_i32, %c0_i32_0 : i32, i32
  }
  func.func @transform_3(%arg0: i32) -> (i32, i32) {
    %c0_i32 = arith.constant 0 : i32
    %c0_i32_0 = arith.constant 0 : i32
    %c0_i32_1 = arith.constant 0 : i32
    return %c0_i32, %c0_i32_0 : i32, i32
  }
  func.func @transform_4(%arg0: i32) -> (i32, i32) {
    %c0_i32 = arith.constant 0 : i32
    %c0_i32_0 = arith.constant 0 : i32
    %c0_i32_1 = arith.constant 0 : i32
    return %c0_i32, %c0_i32_0 : i32, i32
  }
  func.func @transform_5(%arg0: i32) -> (i32, i32) {
    %c0_i32 = arith.constant 0 : i32
    %c0_i32_0 = arith.constant 0 : i32
    %c0_i32_1 = arith.constant 0 : i32
    return %c0_i32, %c0_i32_0 : i32, i32
  }
  func.func @transform_6(%arg0: i32) -> (i32, i32) {
    %c0_i32 = arith.constant 0 : i32
    %c0_i32_0 = arith.constant 0 : i32
    %c0_i32_1 = arith.constant 0 : i32
    return %c0_i32, %c0_i32_0 : i32, i32
  }
  func.func @transform_7(%arg0: i32) -> (i32, i32) {
    %c0_i32 = arith.constant 0 : i32
    %c0_i32_0 = arith.constant 0 : i32
    %c0_i32_1 = arith.constant 0 : i32
    return %c0_i32, %c0_i32_0 : i32, i32
  }
  func.func @transform_8(%arg0: i32) -> (i32, i32) {
    %c0_i32 = arith.constant 0 : i32
    %c0_i32_0 = arith.constant 0 : i32
    %c0_i32_1 = arith.constant 0 : i32
    return %c0_i32, %c0_i32_0 : i32, i32
  }
  func.func @transform_9(%arg0: i32) -> (i32, i32) {
    %c0_i32 = arith.constant 0 : i32
    %c0_i32_0 = arith.constant 0 : i32
    return %arg0, %c0_i32 : i32, i32
  }
}

</mosaic_0001>

<bundles_post_ra>
// kernel: dynamics_mlp.1
= control target key start
LH: loop header
LB: loop body
LE: loop exit
PB: predicated region body
PF: predicated region fallthrough
CT: control target
= control target key end

     0   :  { %14 = vsyncpa [#allocation3], 0  ;;  %s1413_s0 = inlined_call_operand.vmem [shape: bf16[8,32], index: 0, kind: input, shape index: {}]   ;;  %s1414_s1 = inlined_call_operand.hbm [shape: bf16[32,256], index: 1, kind: input, shape index: {}]   ;;  %s1415_s2 = inlined_call_operand.vmem [shape: f32[1,256], index: 2, kind: input, shape index: {}]   ;;  %s1416_s3 = inlined_call_operand.hbm [shape: bf16[256,256], index: 3, kind: input, shape index: {}]   ;;  %s1417_s4 = inlined_call_operand.vmem [shape: f32[1,256], index: 4, kind: input, shape index: {}]   ;;  %s1418_s5 = inlined_call_operand.hbm [shape: bf16[256,256], index: 5, kind: input, shape index: {}]   ;;  %s1419_s6 = inlined_call_operand.vmem [shape: f32[1,256], index: 6, kind: input, shape index: {}]   ;;  %s1420_s7 = inlined_call_operand.hbm [shape: bf16[256,128], index: 7, kind: input, shape index: {}]   ;;  %s1421_s8 = inlined_call_operand.vmem [shape: f32[1,128], index: 8, kind: input, shape index: {}]   ;;  %s1422_s9 = inlined_call_operand.vmem [shape: bf16[8,128], index: 9, kind: output, shape index: {}]  }
   0x1   :  { %15 = vsyncpa [#allocation5], 0 }
   0x2   :  { %16 = vsyncpa [#allocation8], 0  ;;  %s1248_s30 = smov [#allocation4]   ;;  %s1249_s11 = smov [#allocation2]  }
   0x3   :  { %s38_s10 = sshll.u32 %s1248_s30, 4  ;;  %s24_s12 = sshll.u32 %s1249_s11, 4  ;;  %s39_s10 = int_to_ptr.vmem [resolvable:$true] %s38_s10  ;;  %s1307_s12 = int_to_ptr.vmem [resolvable:$true] %s24_s12 }
   0x4   :  { %s1154_s15 = scalar_lea.hbm %s1416_s3, 4096 }
   0x5   :  { %p1155_p0 = scmp.ne.s32.totalorder %s1416_s3, %s1154_s15  ;;  %p1158_p1 = scmp.lt.u32.totalorder %s1154_s15, %s1416_s3 }
   0x7   :  { %p1160_p2 = pnand %p1158_p1, %p1155_p0 }
   0x9   :  { %1163 = shalt.err (!%p1160_p2)
}
   0xa   :  { %s1164_s20 = scalar_lea.vmem %s39_s10, 4096  ;;  %p1169_p4 = scmp.lt.s32.totalorder %s39_s10, %s39_s10 }
   0xb   :  { %p1165_p3 = scmp.ne.s32.totalorder %s39_s10, %s1164_s20  ;;  %p1170_p5 = scmp.lt.s32.totalorder %s1164_s20, %s1164_s20 }
   0xd   :  { %p1171_p6 = por %p1170_p5, %p1169_p4 }
   0xf   :  { %p1172_p7 = pnand %p1171_p6, %p1165_p3 }
  0x11   :  { %1175 = shalt.err (!%p1172_p7)
}
  0x12   :  { %s1250_s21 = smov 128   ;;  %s1251_s22 = smov 8  }
  0x13   :  { %44 = dma.hbm_to_vmem [thread:$0]  %s1416_s3, 4096, %s39_s10, [#allocation5], %s1250_s21, %s1250_s21, %s1251_s22  }
  0x14   :  { %s1176_s27 = scalar_lea.hbm %s1414_s1, 512 }
  0x15   :  { %p1177_p8 = scmp.ne.s32.totalorder %s1414_s1, %s1176_s27  ;;  %p1180_p9 = scmp.lt.u32.totalorder %s1176_s27, %s1414_s1 }
  0x17   :  { %p1182_p10 = pnand %p1180_p9, %p1177_p8 }
  0x19   :  { %1185 = shalt.err (!%p1182_p10)
}
  0x1a   :  { %s1186_s13 = scalar_lea.vmem %s1307_s12, 512  ;;  %p1191_p12 = scmp.lt.s32.totalorder %s1307_s12, %s1307_s12 }
  0x1b   :  { %p1187_p11 = scmp.ne.s32.totalorder %s1307_s12, %s1186_s13  ;;  %p1192_p13 = scmp.lt.s32.totalorder %s1186_s13, %s1186_s13 }
  0x1d   :  { %p1193_p0 = por %p1192_p13, %p1191_p12 }
  0x1f   :  { %p1194_p1 = pnand %p1193_p0, %p1187_p11 }
  0x21   :  { %1197 = shalt.err (!%p1194_p1)
}
  0x22   :  { %30 = dma.hbm_to_vmem [thread:$0]  %s1414_s1, 512, %s1307_s12, [#allocation3], %s1250_s21, %s1250_s21, %s1251_s22  }
  0x23   :  { %s1252_s14 = smov [#allocation6]   ;;  %s1253_s16 = smov [#allocation7]  }
  0x24   :  { %s52_s15 = sshll.u32 %s1252_s14, 4  ;;  %s66_s17 = sshll.u32 %s1253_s16, 4  ;;  %s53_s15 = int_to_ptr.vmem [resolvable:$true] %s52_s15  ;;  %s1344_s17 = int_to_ptr.vmem [resolvable:$true] %s66_s17 }
  0x25   :  { %s1198_s20 = scalar_lea.hbm %s1418_s5, 4096 }
  0x26   :  { %p1199_p2 = scmp.ne.s32.totalorder %s1418_s5, %s1198_s20  ;;  %p1202_p3 = scmp.lt.u32.totalorder %s1198_s20, %s1418_s5 }
  0x28   :  { %p1204_p4 = pnand %p1202_p3, %p1199_p2 }
  0x2a   :  { %1207 = shalt.err (!%p1204_p4)
}
  0x2b   :  { %s1208_s1 = scalar_lea.vmem %s53_s15, 4096  ;;  %p1213_p6 = scmp.lt.s32.totalorder %s53_s15, %s53_s15 }
  0x2c   :  { %p1209_p5 = scmp.ne.s32.totalorder %s53_s15, %s1208_s1  ;;  %p1214_p7 = scmp.lt.s32.totalorder %s1208_s1, %s1208_s1 }
  0x2e   :  { %p1215_p8 = por %p1214_p7, %p1213_p6 }
  0x30   :  { %p1216_p9 = pnand %p1215_p8, %p1209_p5 }
  0x32   :  { %1219 = shalt.err (!%p1216_p9)
}
  0x33   :  { %58 = dma.hbm_to_vmem [thread:$0]  %s1418_s5, 4096, %s53_s15, [#allocation5], %s1250_s21, %s1250_s21, %s1251_s22  }
  0x34   :  { %s1220_s30 = scalar_lea.hbm %s1420_s7, 2048 }
  0x35   :  { %p1221_p10 = scmp.ne.s32.totalorder %s1420_s7, %s1220_s30  ;;  %p1224_p11 = scmp.lt.u32.totalorder %s1220_s30, %s1420_s7 }
  0x37   :  { %p1226_p12 = pnand %p1224_p11, %p1221_p10 }
  0x39   :  { %1229 = shalt.err (!%p1226_p12)
}
  0x3a   :  { %s1230_s14 = scalar_lea.vmem %s1344_s17, 2048  ;;  %p1235_p0 = scmp.lt.s32.totalorder %s1344_s17, %s1344_s17 }
  0x3b   :  { %p1231_p13 = scmp.ne.s32.totalorder %s1344_s17, %s1230_s14  ;;  %p1236_p1 = scmp.lt.s32.totalorder %s1230_s14, %s1230_s14 }
  0x3d   :  { %p1237_p2 = por %p1236_p1, %p1235_p0 }
  0x3f   :  { %p1238_p3 = pnand %p1237_p2, %p1231_p13 }
  0x41   :  { %1241 = shalt.err (!%p1238_p3)
}
  0x42   :  { %s1254_s5 = smov 64   ;;  %s1255_s21 = smov 4  }
  0x43   :  { %72 = dma.hbm_to_vmem [thread:$0]  %s1420_s7, 2048, %s1344_s17, [#allocation8], %s1254_s5, %s1254_s5, %s1255_s21  }
  0x44   :  { %1242 = dma.done.wait [#allocation3], 512  }
  0x45   :  { %1243 = vsyncadd [#allocation3], 4294966784 }
  0x46   :  { %1244 = dma.done.wait [#allocation5], 8192  }
  0x47   :  { %1245 = vsyncadd [#allocation5], 4294959104 }
  0x48   :  { %1246 = dma.done.wait [#allocation8], 2048  }
  0x49   :  { %1247 = vsyncadd [#allocation8], 4294965248  ;;  %v1256_v0 = vmov 0   ;;  %v1033_v1 = vld [vmem:[#allocation2 + $0x4] ss:$8 sps:$4 sm:$0xff]   ;;  %vm131_vm0 = vcmask 261120  }
  0x4a   :  { %167 = vmatprep.mubr.bf16.mxu0 %v1256_v0  ;;  %v1035_v2 = vld [vmem:[#allocation2] ss:$8 sps:$4 sm:$0xff]   ;;  %135 = vmatprep.subr.bf16.mxu0 %v1033_v1  ;;  %v1036_v3 = vld [vmem:[#allocation2 + $0x14] ss:$8 sps:$4 sm:$0xff]   ;;  %v1038_v4 = vld [vmem:[#allocation2 + $0x10] ss:$8 sps:$4 sm:$0xff]  }
  0x4b   :  { %136 = vmatpush1.bf16.msra.mxu0 %v1035_v2  ;;  %v1040_v5 = vld [vmem:[#allocation4 + $0x4] ss:$8 sps:$4 sm:$0xff]   ;;  %v1042_v6 = vld [vmem:[#allocation4] ss:$8 sps:$4 sm:$0xff]   ;;  %v1043_v7 = vld [vmem:[#allocation4 + $0x14] ss:$8 sps:$4 sm:$0xff]  }
  0x4c   :  { %137 = vmatprep.subr.bf16.mxu0 %v1036_v3  ;;  %v1039_v8 = vld [vmem:[%s1413_s0] sm:$0xff]   ;;  %386 = vmatprep.subr.bf16.mxu1 %v1040_v5  ;;  %v1045_v9 = vld [vmem:[#allocation4 + $0x10] ss:$8 sps:$4 sm:$0xff]   ;;  %v1049_v12 = vld [vmem:[#allocation4 + $0x34] ss:$8 sps:$4 sm:$0xff]   ;;  %v96_v3 = vlaneseq }
  0x4d   :  { %387 = vmatpush1.bf16.msra.mxu1 %v1042_v6  ;;  %v1046_v10 = vld [vmem:[#allocation4 + $0x24] ss:$8 sps:$4 sm:$0xff]   ;;  %v1048_v11 = vld [vmem:[#allocation4 + $0x20] ss:$8 sps:$4 sm:$0xff]   ;;  %v1051_v13 = vld [vmem:[#allocation4 + $0x30] ss:$8 sps:$4 sm:$0xff]  }
  0x4e   :  { %388 = vmatprep.subr.bf16.mxu1 %v1043_v7  ;;  %v1052_v14 = vld [vmem:[#allocation4 + $0x44] ss:$8 sps:$4 sm:$0xff]   ;;  %v1054_v15 = vld [vmem:[#allocation4 + $0x40] ss:$8 sps:$4 sm:$0xff]   ;;  %v1055_v16 = vld [vmem:[#allocation4 + $0x54] ss:$8 sps:$4 sm:$0xff]  }
  0x4f   :  { %138 = vmatpush1.bf16.msra.mxu0 %v1038_v4  ;;  %v1057_v17 = vld [vmem:[#allocation4 + $0x50] ss:$8 sps:$4 sm:$0xff]   ;;  %v1058_v18 = vld [vmem:[#allocation4 + $0x64] ss:$8 sps:$4 sm:$0xff]   ;;  %v1060_v19 = vld [vmem:[#allocation4 + $0x60] ss:$8 sps:$4 sm:$0xff]  }
  0x50   :  { %v1061_v20 = vld [vmem:[#allocation4 + $0x74] ss:$8 sps:$4 sm:$0xff]   ;;  %v1063_v21 = vld [vmem:[#allocation4 + $0x70] ss:$8 sps:$4 sm:$0xff]   ;;  %v1064_v22 = vld [vmem:[#allocation4 + $0x84] ss:$8 sps:$4 sm:$0xff]  }
  0x51   :  { %389 = vmatpush1.bf16.msra.mxu1 %v1045_v9  ;;  %v1066_v23 = vld [vmem:[#allocation4 + $0x80] ss:$8 sps:$4 sm:$0xff]   ;;  %v1067_v24 = vld [vmem:[#allocation4 + $0x94] ss:$8 sps:$4 sm:$0xff]   ;;  %v1069_v25 = vld [vmem:[#allocation4 + $0x90] ss:$8 sps:$4 sm:$0xff]  }
  0x52   :  { %918 = vmatmul.mubr.msk.bf16.vlgmr.msra.gmra.mrb[0].mxu0 %vm131_vm0, %v1039_v8  ;;  %390 = vmatprep.subr.bf16.mxu1 %v1046_v10  ;;  %v1070_v26 = vld [vmem:[#allocation4 + $0xa4] ss:$8 sps:$4 sm:$0xff]   ;;  %v1072_v27 = vld [vmem:[#allocation4 + $0xa0] ss:$8 sps:$4 sm:$0xff]   ;;  %v1073_v28 = vld [vmem:[#allocation4 + $0xb4] ss:$8 sps:$4 sm:$0xff]  }
  0x53   :  { %v1075_v29 = vld [vmem:[#allocation4 + $0xb0] ss:$8 sps:$4 sm:$0xff]   ;;  %v1076_v30 = vld [vmem:[#allocation4 + $0xc4] ss:$8 sps:$4 sm:$0xff]   ;;  %v1078_v31 = vld [vmem:[#allocation4 + $0xc0] ss:$8 sps:$4 sm:$0xff]  }
  0x54   :  { %v1079_v32 = vld [vmem:[#allocation4 + $0xd4] ss:$8 sps:$4 sm:$0xff]   ;;  %v1081_v33 = vld [vmem:[#allocation4 + $0xd0] ss:$8 sps:$4 sm:$0xff]   ;;  %v1082_v34 = vld [vmem:[#allocation4 + $0xe4] ss:$8 sps:$4 sm:$0xff]  }
  0x55   :  { %391 = vmatpush1.bf16.msra.mxu1 %v1048_v11  ;;  %v1084_v35 = vld [vmem:[#allocation4 + $0xe0] ss:$8 sps:$4 sm:$0xff]   ;;  %v1085_v36 = vld [vmem:[#allocation4 + $0xf4] ss:$8 sps:$4 sm:$0xff]   ;;  %v1087_v37 = vld [vmem:[#allocation4 + $0xf0] ss:$8 sps:$4 sm:$0xff]  }
  0x56   :  { %392 = vmatprep.subr.bf16.mxu1 %v1049_v12  ;;  %v1088_v38 = vld [vmem:[#allocation6] ss:$8 sps:$4 sm:$0xff]   ;;  %v1090_v39 = vld [vmem:[#allocation6 + $0x4] ss:$8 sps:$4 sm:$0xff]   ;;  %v1093_v40 = vld [vmem:[#allocation6 + $0x14] ss:$8 sps:$4 sm:$0xff]  }
  0x57   :  { %637 = vmatprep.subr.bf16.mxu0 %v1090_v39  ;;  %v1091_v41 = vld [vmem:[#allocation6 + $0x10] ss:$8 sps:$4 sm:$0xff]   ;;  %v1096_v42 = vld [vmem:[#allocation6 + $0x24] ss:$8 sps:$4 sm:$0xff]   ;;  %v1094_v43 = vld [vmem:[#allocation6 + $0x20] ss:$8 sps:$4 sm:$0xff]  }
  0x58   :  { %638 = vmatpush1.bf16.msra.mxu0 %v1088_v38  ;;  %v1099_v44 = vld [vmem:[#allocation6 + $0x34] ss:$8 sps:$4 sm:$0xff]   ;;  %v1097_v45 = vld [vmem:[#allocation6 + $0x30] ss:$8 sps:$4 sm:$0xff]   ;;  %v1102_v46 = vld [vmem:[#allocation6 + $0x44] ss:$8 sps:$4 sm:$0xff]  }
  0x59   :  { %393 = vmatpush1.bf16.msra.mxu1 %v1051_v13  ;;  %639 = vmatprep.subr.bf16.mxu0 %v1093_v40  ;;  %v1100_v47 = vld [vmem:[#allocation6 + $0x40] ss:$8 sps:$4 sm:$0xff]   ;;  %v1105_v48 = vld [vmem:[#allocation6 + $0x54] ss:$8 sps:$4 sm:$0xff]   ;;  %v1103_v49 = vld [vmem:[#allocation6 + $0x50] ss:$8 sps:$4 sm:$0xff]  }
  0x5a   :  { %394 = vmatprep.subr.bf16.mxu1 %v1052_v14  ;;  %v1108_v50 = vld [vmem:[#allocation6 + $0x64] ss:$8 sps:$4 sm:$0xff]   ;;  %v1106_v51 = vld [vmem:[#allocation6 + $0x60] ss:$8 sps:$4 sm:$0xff]   ;;  %v1111_v52 = vld [vmem:[#allocation6 + $0x74] ss:$8 sps:$4 sm:$0xff]  }
  0x5b   :  { %v1109_v53 = vld [vmem:[#allocation6 + $0x70] ss:$8 sps:$4 sm:$0xff]   ;;  %v1114_v54 = vld [vmem:[#allocation6 + $0x84] ss:$8 sps:$4 sm:$0xff]   ;;  %v1112_v55 = vld [vmem:[#allocation6 + $0x80] ss:$8 sps:$4 sm:$0xff]  }
  0x5c   :  { %640 = vmatpush1.bf16.msra.mxu0 %v1091_v41  ;;  %v1117_v56 = vld [vmem:[#allocation6 + $0x94] ss:$8 sps:$4 sm:$0xff]   ;;  %v1115_v57 = vld [vmem:[#allocation6 + $0x90] ss:$8 sps:$4 sm:$0xff]   ;;  %v1120_v58 = vld [vmem:[#allocation6 + $0xa4] ss:$8 sps:$4 sm:$0xff]  }
  0x5d   :  { %395 = vmatpush1.bf16.msra.mxu1 %v1054_v15  ;;  %641 = vmatprep.subr.bf16.mxu0 %v1096_v42  ;;  %v1118_v59 = vld [vmem:[#allocation6 + $0xa0] ss:$8 sps:$4 sm:$0xff]   ;;  %v1123_v60 = vld [vmem:[#allocation6 + $0xb4] ss:$8 sps:$4 sm:$0xff]   ;;  %v1121_v61 = vld [vmem:[#allocation6 + $0xb0] ss:$8 sps:$4 sm:$0xff]  }
  0x5e   :  { %396 = vmatprep.subr.bf16.mxu1 %v1055_v16  ;;  %v1126_v62 = vld [vmem:[#allocation6 + $0xc4] ss:$8 sps:$4 sm:$0xff]   ;;  %v1124_v63 = vld [vmem:[#allocation6 + $0xc0] ss:$8 sps:$4 sm:$0xff]   ;;  %v1129_v1 = vld [vmem:[#allocation6 + $0xd4] ss:$8 sps:$4 sm:$0xff]  }
  0x5f   :  { %v1127_v2 = vld [vmem:[#allocation6 + $0xd0] ss:$8 sps:$4 sm:$0xff]   ;;  %v97_v4 = vshrl.u32 %v96_v3, 7  ;;  %v94_v6 = vld [vmem:[%s1415_s2] sm:$0x3] }
  0x60   :  { %642 = vmatpush1.bf16.msra.mxu0 %v1094_v43 }
  0x61   :  { %397 = vmatpush1.bf16.msra.mxu1 %v1057_v17  ;;  %643 = vmatprep.subr.bf16.mxu0 %v1099_v44  ;;  %v1382_v5 = vsub.s32 0, %v97_v4  ;;  %v1387_v7 = vsub.s32 1, %v97_v4 }
  0x62   :  { %398 = vmatprep.subr.bf16.mxu1 %v1058_v18 }
  0x63   :  { %v99_v8 = vrot.slane %v94_v6, %v1382_v5  ;;  %v103_v10 = vrot.slane %v94_v6, %v1387_v7 }
  0x64   :  { %644 = vmatpush1.bf16.msra.mxu0 %v1097_v45 }
  0x65   :  { %399 = vmatpush1.bf16.msra.mxu1 %v1060_v19  ;;  %645 = vmatprep.subr.bf16.mxu0 %v1102_v46 }
  0x66   :  { %400 = vmatprep.subr.bf16.mxu1 %v1061_v20 }
  0x68   :  { %646 = vmatpush1.bf16.msra.mxu0 %v1100_v47 }
  0x69   :  { %401 = vmatpush1.bf16.msra.mxu1 %v1063_v21  ;;  %647 = vmatprep.subr.bf16.mxu0 %v1105_v48 }
  0x6a   :  { %402 = vmatprep.subr.bf16.mxu1 %v1064_v22  ;;  %v1132_v22 = vld [vmem:[#allocation6 + $0xe4] ss:$8 sps:$4 sm:$0xff]  }
  0x6c   :  { %648 = vmatpush1.bf16.msra.mxu0 %v1103_v49 }
  0x6d   :  { %403 = vmatpush1.bf16.msra.mxu1 %v1066_v23  ;;  %649 = vmatprep.subr.bf16.mxu0 %v1108_v50  ;;  %v1130_v23 = vld [vmem:[#allocation6 + $0xe0] ss:$8 sps:$4 sm:$0xff]  }
  0x6e   :  { %404 = vmatprep.subr.bf16.mxu1 %v1067_v24  ;;  %v1135_v24 = vld [vmem:[#allocation6 + $0xf4] ss:$8 sps:$4 sm:$0xff]  }
  0x70   :  { %650 = vmatpush1.bf16.msra.mxu0 %v1106_v51 }
  0x71   :  { %405 = vmatpush1.bf16.msra.mxu1 %v1069_v25  ;;  %651 = vmatprep.subr.bf16.mxu0 %v1111_v52  ;;  %v1133_v25 = vld [vmem:[#allocation6 + $0xf0] ss:$8 sps:$4 sm:$0xff]   ;;  %v1147_v52 = vld [vmem:[#allocation7 + $0x28] sm:$0xff]  }
  0x72   :  { %406 = vmatprep.subr.bf16.mxu1 %v1070_v26  ;;  %v1136_v26 = vld [vmem:[#allocation7 + $0x40] sm:$0xff]  }
  0x74   :  { %652 = vmatpush1.bf16.msra.mxu0 %v1109_v53  ;;  %v1148_v53 = vld [vmem:[#allocation7 + $0x70] sm:$0xff]  }
  0x75   :  { %407 = vmatpush1.bf16.msra.mxu1 %v1072_v27  ;;  %653 = vmatprep.subr.bf16.mxu0 %v1114_v54  ;;  %v1137_v27 = vld [vmem:[#allocation7] sm:$0xff]   ;;  %v1149_v54 = vld [vmem:[#allocation7 + $0x30] sm:$0xff]  }
  0x76   :  { %408 = vmatprep.subr.bf16.mxu1 %v1073_v28  ;;  %v1138_v28 = vld [vmem:[#allocation7 + $0x48] sm:$0xff]  }
  0x78   :  { %654 = vmatpush1.bf16.msra.mxu0 %v1112_v55  ;;  %v1150_v55 = vld [vmem:[#allocation7 + $0x78] sm:$0xff]  }
  0x79   :  { %409 = vmatpush1.bf16.msra.mxu1 %v1075_v29  ;;  %655 = vmatprep.subr.bf16.mxu0 %v1117_v56  ;;  %v1139_v29 = vld [vmem:[#allocation7 + $0x8] sm:$0xff]   ;;  %v1151_v56 = vld [vmem:[#allocation7 + $0x38] sm:$0xff]  }
  0x7a   :  { %410 = vmatprep.subr.bf16.mxu1 %v1076_v30  ;;  %v1140_v30 = vld [vmem:[#allocation7 + $0x50] sm:$0xff]  }
  0x7c   :  { %656 = vmatpush1.bf16.msra.mxu0 %v1115_v57  ;;  %v465_v57 = vld [vmem:[%s1419_s6] sm:$0x3] }
  0x7d   :  { %411 = vmatpush1.bf16.msra.mxu1 %v1078_v31  ;;  %657 = vmatprep.subr.bf16.mxu0 %v1120_v58  ;;  %v1141_v31 = vld [vmem:[#allocation7 + $0x10] sm:$0xff]   ;;  %v470_v58 = vrot.slane %v465_v57, %v1382_v5 }
  0x7e   :  { %412 = vmatprep.subr.bf16.mxu1 %v1079_v32  ;;  %v1142_v32 = vld [vmem:[#allocation7 + $0x58] sm:$0xff]  }
  0x80   :  { %658 = vmatpush1.bf16.msra.mxu0 %v1118_v59 }
  0x81   :  { %413 = vmatpush1.bf16.msra.mxu1 %v1081_v33  ;;  %659 = vmatprep.subr.bf16.mxu0 %v1123_v60  ;;  %v1143_v33 = vld [vmem:[#allocation7 + $0x18] sm:$0xff]   ;;  %v474_v60 = vrot.slane %v465_v57, %v1387_v7 }
  0x82   :  { %414 = vmatprep.subr.bf16.mxu1 %v1082_v34  ;;  %v1144_v34 = vld [vmem:[#allocation7 + $0x60] sm:$0xff]  }
  0x84   :  { %660 = vmatpush1.bf16.msra.mxu0 %v1121_v61 }
  0x85   :  { %415 = vmatpush1.bf16.msra.mxu1 %v1084_v35  ;;  %661 = vmatprep.subr.bf16.mxu0 %v1126_v62  ;;  %v1145_v35 = vld [vmem:[#allocation7 + $0x20] sm:$0xff]  }
  0x86   :  { %416 = vmatprep.subr.bf16.mxu1 %v1085_v36  ;;  %v1146_v36 = vld [vmem:[#allocation7 + $0x68] sm:$0xff]  }
  0x88   :  { %662 = vmatpush1.bf16.msra.mxu0 %v1124_v63 }
  0x89   :  { %417 = vmatpush1.bf16.msra.mxu1 %v1087_v37  ;;  %663 = vmatprep.subr.bf16.mxu0 %v1129_v1  ;;  %v214_v37 = vld [vmem:[%s1417_s4] sm:$0x3] }
  0x8a   :  { %1002 = vmatprep.subr.bf16.mxu1 %v1136_v26  ;;  %v219_v38 = vrot.slane %v214_v37, %v1382_v5  ;;  %v223_v40 = vrot.slane %v214_v37, %v1387_v7  ;;  %v983_v7 = vld [vmem:[%s1421_s8] ss:$0 sm:$0xff] }
  0x8c   :  { %664 = vmatpush1.bf16.msra.mxu0 %v1127_v2 }
  0x8d   :  { %665 = vmatprep.subr.bf16.mxu0 %v1132_v22 }
  0x90   :  { %666 = vmatpush1.bf16.msra.mxu0 %v1130_v23 }
  0x91   :  { %667 = vmatprep.subr.bf16.mxu0 %v1135_v24 }
  0x94   :  { %668 = vmatpush1.bf16.msra.mxu0 %v1133_v25 }
 0x125   :  { %v169_v9 = vpop.f32.mrb[0].mxu0 }
 0x126   :  { %v171_v11 = vpop.f32.mrb[1].mxu0  ;;  %v170_v13 = vadd.f32 %v169_v9, %v99_v8 }
 0x127   :  { %v173_v12 = vpop.f32.mrb[2].mxu0  ;;  %v172_v16 = vadd.f32 %v171_v11, %v103_v10 }
 0x128   :  { %v174_v14 = vadd.f32 %v173_v12, %v99_v8  ;;  %v175_v15 = vpop.f32.mrb[3].mxu0 }
 0x129   :  { %v176_v17 = vadd.f32 %v175_v15, %v103_v10 }
 0x12a   :  { %v178_v18 = vpack.c.bf16 %v174_v14, %v170_v13 }
 0x12b   :  { %v179_v19 = vpack.c.bf16 %v176_v17, %v172_v16 }
 0x12c   :  { %v180_v21 = vmax.bf16 %v1256_v0, %v178_v18 }
 0x12d   :  { %v181_v20 = vmax.bf16 %v1256_v0, %v179_v19 }
 0x12f   :  { %418 = vmatprep.mubr.bf16.mxu1 %v181_v20 }
 0x130   :  { %419 = vmatmul.mubr.bf16.vlgmr.msra.gmra.mrb[0].mxu1 %v180_v21 }
 0x131   :  { %1003 = vmatpush3.bf16.msra.mxu1 %v1137_v27 }
 0x132   :  { %1004 = vmatprep.subr.bf16.mxu1 %v1138_v28 }
 0x135   :  { %1005 = vmatpush3.bf16.msra.mxu1 %v1139_v29 }
 0x136   :  { %1006 = vmatprep.subr.bf16.mxu1 %v1140_v30 }
 0x139   :  { %1007 = vmatpush3.bf16.msra.mxu1 %v1141_v31 }
 0x13a   :  { %1008 = vmatprep.subr.bf16.mxu1 %v1142_v32 }
 0x13d   :  { %1009 = vmatpush3.bf16.msra.mxu1 %v1143_v33 }
 0x13e   :  { %1010 = vmatprep.subr.bf16.mxu1 %v1144_v34 }
 0x141   :  { %1011 = vmatpush3.bf16.msra.mxu1 %v1145_v35 }
 0x142   :  { %1012 = vmatprep.subr.bf16.mxu1 %v1146_v36 }
 0x145   :  { %1013 = vmatpush3.bf16.msra.mxu1 %v1147_v52 }
 0x146   :  { %1014 = vmatprep.subr.bf16.mxu1 %v1148_v53 }
 0x149   :  { %1015 = vmatpush3.bf16.msra.mxu1 %v1149_v54 }
 0x14a   :  { %1016 = vmatprep.subr.bf16.mxu1 %v1150_v55 }
 0x14d   :  { %1017 = vmatpush3.bf16.msra.mxu1 %v1151_v56 }
 0x203   :  { %v420_v39 = vpop.f32.mrb[0].mxu1 }
 0x204   :  { %v422_v41 = vpop.f32.mrb[1].mxu1  ;;  %v421_v43 = vadd.f32 %v420_v39, %v219_v38 }
 0x205   :  { %v424_v42 = vpop.f32.mrb[2].mxu1  ;;  %v423_v46 = vadd.f32 %v422_v41, %v223_v40 }
 0x206   :  { %v425_v44 = vadd.f32 %v424_v42, %v219_v38  ;;  %v426_v45 = vpop.f32.mrb[3].mxu1 }
 0x207   :  { %v427_v47 = vadd.f32 %v426_v45, %v223_v40 }
 0x208   :  { %v429_v48 = vpack.c.bf16 %v425_v44, %v421_v43 }
 0x209   :  { %v430_v49 = vpack.c.bf16 %v427_v47, %v423_v46 }
 0x20a   :  { %v431_v51 = vmax.bf16 %v1256_v0, %v429_v48 }
 0x20b   :  { %v432_v50 = vmax.bf16 %v1256_v0, %v430_v49 }
 0x20d   :  { %669 = vmatprep.mubr.bf16.mxu0 %v432_v50 }
 0x20e   :  { %670 = vmatmul.mubr.bf16.vlgmr.msra.gmra.mrb[4].mxu0 %v431_v51 }
 0x2e1   :  { %v671_v59 = vpop.f32.mrb[4].mxu0 }
 0x2e2   :  { %v673_v61 = vpop.f32.mrb[5].mxu0  ;;  %v672_v63 = vadd.f32 %v671_v59, %v470_v58 }
 0x2e3   :  { %v675_v62 = vpop.f32.mrb[6].mxu0  ;;  %v674_v3 = vadd.f32 %v673_v61, %v474_v60 }
 0x2e4   :  { %v676_v1 = vadd.f32 %v675_v62, %v470_v58  ;;  %v677_v2 = vpop.f32.mrb[7].mxu0 }
 0x2e5   :  { %v678_v4 = vadd.f32 %v677_v2, %v474_v60 }
 0x2e6   :  { %v680_v6 = vpack.c.bf16 %v676_v1, %v672_v63 }
 0x2e7   :  { %v681_v8 = vpack.c.bf16 %v678_v4, %v674_v3 }
 0x2e8   :  { %v682_v10 = vmax.bf16 %v1256_v0, %v680_v6 }
 0x2e9   :  { %v683_v9 = vmax.bf16 %v1256_v0, %v681_v8 }
 0x2eb   :  { %851 = vmatprep.mubr.bf16.mxu1 %v683_v9 }
 0x2ec   :  { %852 = vmatmul.mubr.bf16.vlgmr.msra.gmra.mrb[4].mxu1 %v682_v10 }
 0x3bf   :  { %v1018_v11 = vpop.f32.mrb[4].mxu1 }
 0x3c0   :  { %v1019_v5 = vpop.f32.mrb[5].mxu1 }
 0x3c1   :  { %v1020_v12 = vadd.f32 %v1019_v5, %v1018_v11  ;;  %v1021_v13 = vpop.f32.mrb[6].mxu1 }
 0x3c2   :  { %v1022_v14 = vpop.f32.mrb[7].mxu1 }
 0x3c3   :  { %v1023_v15 = vadd.f32 %v1022_v14, %v1021_v13  ;;  %v854_v16 = vadd.f32 %v1020_v12, %v983_v7 }
 0x3c5   :  { %v857_v17 = vadd.f32 %v1023_v15, %v983_v7 }
 0x3c7   :  { %v860_v18 = vpack.c.bf16 %v857_v17, %v854_v16 }
 0x3c9   :  { %1152 = vtanh.bf16 %v860_v18 }
 0x3d4   :  { %v1153_v19 = vpop.eup %1152 }
 0x3d5   :  { %v1000_v20 = vcombine.low %v1153_v19, %v1153_v19 }
 0x3d7   :  { %869 = vst [vmem:[#allocation9] sm:$0xf] %v1000_v20 }
 0x3de   :  { %v888_v0 = vld [vmem:[#allocation9] sm:$0xf] }
 0x3df   :  { %889 = vst [vmem:[%s1422_s9] sm:$0xf] %v888_v0 }
 0x3e0   :  { %906 = vsyncpa [#allocation3], 1 }
 0x3e1   :  { %907 = vsyncpa [#allocation5], 1 }
 0x3e2   :  { %908 = vsyncpa [#allocation8], 1 }

</bundles_post_ra>
